<compile_context>
chip_gen: v6e
topology: v6e:2x2x1
jax: 0.10.0
libtpu: 0.0.40
codegen_flags: <defaults>
</compile_context>

<pallas_src>
import jax
import jax.numpy as jnp
from jax.experimental import pallas as pl
from jax.experimental.pallas import tpu as pltpu


def _round_up(x, m):
    return (x + m - 1) // m * m


def glcu_kernel(x_ref, w1_ref, b1_ref, w2_ref, b2_ref,
                d1_ref, c1_ref, d2_ref, c2_ref,
                out_ref, task_ref):
    """One batch tile of the GLCU forward pass.

    NOTE: every op here is row-wise independent, so the undefined rows of a
    partial trailing batch tile cannot contaminate real rows and their
    writeback is masked by Pallas.  Do not add cross-row (batch) reductions
    without revisiting this.
    """
    cdt = w1_ref.dtype  # MXU operand dtype (bf16 if params were prepared as bf16)

    # Cast in-kernel: avoids any wrapper-side copy / re-materialization of feat.
    x = x_ref[...].astype(cdt)

    # Ascending MLP: relu(x @ W1 + b1) -> task logits.  f32 accumulation.
    h1 = jnp.dot(x, w1_ref[...], preferred_element_type=jnp.float32) + b1_ref[...]
    h1 = jnp.maximum(h1, 0.0)
    task = jnp.dot(h1.astype(cdt), w2_ref[...],
                   preferred_element_type=jnp.float32) + b2_ref[...]
    task_ref[...] = task.astype(task_ref.dtype)

    # Exact softmax over tasks (f32).  The kernel is HBM-bound, so the exact
    # divide (vs approx EUP reciprocal) is free and keeps strict f32 parity.
    m = jnp.max(task, axis=1, keepdims=True)
    e = jnp.exp(task - m)
    p = e / jnp.sum(e, axis=1, keepdims=True)

    # Descending MLP.
    h2 = jnp.dot(p.astype(cdt), d1_ref[...],
                 preferred_element_type=jnp.float32) + c1_ref[...]
    h2 = jnp.maximum(h2, 0.0)
    o = jnp.dot(h2.astype(cdt), d2_ref[...],
                preferred_element_type=jnp.float32) + c2_ref[...]

    # sigmoid(o) == 0.5 * (tanh(o / 2) + 1): single accurate EUP tanh.
    out_ref[...] = (0.5 * (jnp.tanh(0.5 * o) + 1.0)).astype(out_ref.dtype)


def _vmem_budget_bytes():
    """Scoped-VMEM budget, generation-aware with a v7x-safe fallback."""
    cap = None
    try:
        cap = getattr(pltpu.get_tpu_info(), "vmem_capacity_bytes", None)
    except Exception:
        cap = None
    if not cap:
        cap = 64 * 1024 * 1024  # v7x has the smallest physical VMEM
    # Leave ~25% headroom for compiler scratch / semaphores; cap at 96 MiB
    # (v5e/v6e have 128 MiB physical).
    return int(min(cap * 3 // 4, 96 * 1024 * 1024))


def _pick_batch_tile(B, weight_bytes, per_row_io_bytes, per_row_tmp_bytes,
                     budget_bytes, row_align):
    """Largest batch tile whose resident weights + double-buffered I/O tiles +
    f32 intermediates fit the budget.  Also keeps the grid >= 2 for large B so
    the 'parallel' batch axis can span both v7x TensorCores (near-free on
    single-TC v5e/v6e: one extra ~0.35 us grid step)."""
    def fits(tb):
        return (weight_bytes + 2 * tb * per_row_io_bytes
                + tb * per_row_tmp_bytes) <= budget_bytes

    if B <= row_align:
        return B  # single tile; block == full batch dim (layout-exempt)

    cap = B
    if B >= 128:
        cap = min(cap, _round_up(pl.cdiv(B, 2), row_align))
    for cand in (2048, 1024, 512, 256, 128, 64, 32, 16, 8):
        if cand % row_align or cand > cap:
            continue
        if fits(cand):
            return cand
    return row_align


def prepare_glcu_params(params, compute_dtype=jnp.bfloat16):
    """One-time (outside the hot path) cast of the weights to the MXU operand
    dtype; biases are kept f32 (they add into f32 accumulators)."""
    out = {}
    for k, v in params.items():
        if k in ("w1", "w2", "d1", "d2"):
            out[k] = v.astype(compute_dtype)
        else:
            out[k] = v.astype(jnp.float32)
    return out


def glcu_forward(feat, params):
    """feat: [B, in_dim] (any float dtype).  params: dict of [in, out] weights
    and [1, out] biases; the weights' dtype is the MXU operand dtype (use
    prepare_glcu_params(params, jnp.bfloat16) once for the bf16 path)."""
    B, in_dim = feat.shape
    w1, b1, w2, b2 = params["w1"], params["b1"], params["w2"], params["b2"]
    d1, c1, d2, c2 = params["d1"], params["c1"], params["d2"], params["c2"]
    mid = w1.shape[1]
    num_tasks = w2.shape[1]
    cdt = w1.dtype
    out_dtype = feat.dtype  # outputs stream back in the input dtype

    op_bytes = jnp.dtype(cdt).itemsize
    x_bytes = jnp.dtype(feat.dtype).itemsize
    o_bytes = jnp.dtype(out_dtype).itemsize

    # Conservative VMEM accounting (x2 on weights in case the single-buffer
    # request below falls back to default double-buffering).
    weight_bytes = 2 * ((in_dim * mid + mid * num_tasks
                         + num_tasks * mid + mid * in_dim) * op_bytes
                        + (2 * mid + num_tasks + in_dim) * 4)
    per_row_io = in_dim * x_bytes + (in_dim + num_tasks) * o_bytes
    per_row_tmp = 4 * (2 * mid + 3 * num_tasks + 2 * in_dim)  # f32 temporaries

    budget = _vmem_budget_bytes()
    row_align = 16 if op_bytes < 4 else 8  # bf16 packs 16 rows per vreg
    TB = _pick_batch_tile(B, weight_bytes, per_row_io, per_row_tmp,
                          budget, row_align)
    grid = (pl.cdiv(B, TB),)

    out_shape = (jax.ShapeDtypeStruct((B, in_dim), out_dtype),
                 jax.ShapeDtypeStruct((B, num_tasks), out_dtype))

    def build(single_buffer_weights):
        if single_buffer_weights:
            # Constant index_map -> the block never changes; one VMEM copy.
            resident = lambda shape: pl.BlockSpec(
                shape, lambda i: (0, 0), pipeline_mode=pl.Buffered(1))
        else:
            resident = lambda shape: pl.BlockSpec(shape, lambda i: (0, 0))
        return pl.pallas_call(
            glcu_kernel,
            out_shape=out_shape,
            grid=grid,
            in_specs=[
                pl.BlockSpec((TB, in_dim), lambda i: (i, 0)),  # feat, streamed
                resident((in_dim, mid)), resident((1, mid)),
                resident((mid, num_tasks)), resident((1, num_tasks)),
                resident((num_tasks, mid)), resident((1, mid)),
                resident((mid, in_dim)), resident((1, in_dim)),
            ],
            out_specs=(pl.BlockSpec((TB, in_dim), lambda i: (i, 0)),
                       pl.BlockSpec((TB, num_tasks), lambda i: (i, 0))),
            compiler_params=pltpu.CompilerParams(
                dimension_semantics=("parallel",),
                vmem_limit_bytes=budget),
        )

    args = (feat, w1, b1, w2, b2, d1, c1, d2, c2)
    try:
        return build(True)(*args)
    except Exception:
        # Fallback if this Pallas version rejects pipeline_mode=Buffered(1):
        # double-buffered resident weights cost a little extra VMEM only.
        return build(False)(*args)


def init_glcu_params(key, in_dim, num_tasks, mid, init_std=0.001,
                     dtype=jnp.float32):
    """Synthetic init matching GLCU.init_weights (normal weights, zero bias).
    Weights are stored already transposed to [in, out]."""
    k1, k2, k3, k4 = jax.random.split(key, 4)
    return {
        "w1": (jax.random.normal(k1, (in_dim, mid)) * init_std).astype(dtype),
        "b1": jnp.zeros((1, mid), dtype),
        "w2": (jax.random.normal(k2, (mid, num_tasks)) * init_std).astype(dtype),
        "b2": jnp.zeros((1, num_tasks), dtype),
        "d1": (jax.random.normal(k3, (num_tasks, mid)) * init_std).astype(dtype),
        "c1": jnp.zeros((1, mid), dtype),
        "d2": (jax.random.normal(k4, (mid, in_dim)) * init_std).astype(dtype),
        "c2": jnp.zeros((1, in_dim), dtype),
    }


def glcu_reference(feat, params):
    """Plain-JAX (f32) reference of the same forward pass."""
    f32 = lambda a: a.astype(jnp.float32)
    h1 = jax.nn.relu(f32(feat) @ f32(params["w1"]) + f32(params["b1"]))
    task = h1 @ f32(params["w2"]) + f32(params["b2"])
    p = jax.nn.softmax(task, axis=1)
    h2 = jax.nn.relu(p @ f32(params["d1"]) + f32(params["c1"]))
    o = h2 @ f32(params["d2"]) + f32(params["c2"])
    return jax.nn.sigmoid(o), task


if __name__ == "__main__":
    # Small shapes consistent with the module: batch=8, in_feature_dim=32,
    # middle_layers=[32], num_tasks=8.
    B, IN_DIM, MID, NUM_TASKS = 8, 32, 32, 8

    key = jax.random.PRNGKey(0)
    k_feat, k_params = jax.random.split(key)
    feat = jax.random.normal(k_feat, (B, IN_DIM), dtype=jnp.float32)

    # --- f32 weights: strict check against the plain-JAX reference. ---------
    params_f32 = init_glcu_params(k_params, IN_DIM, NUM_TASKS, MID,
                                  dtype=jnp.float32)
    out, task_feat = glcu_forward(feat, params_f32)
    jax.block_until_ready((out, task_feat))

    ref_out, ref_task = glcu_reference(feat, params_f32)
    assert out.shape == (B, IN_DIM) and task_feat.shape == (B, NUM_TASKS)
    assert jnp.allclose(out, ref_out, atol=1e-5), "sigmoid output mismatch (f32)"
    assert jnp.allclose(task_feat, ref_task, atol=1e-5), "task_feat mismatch (f32)"

    # --- bf16 MXU operands (v5e/v6e/v7x mem-bound win), f32 accumulation. ---
    params_bf16 = prepare_glcu_params(params_f32, jnp.bfloat16)
    out_bf, task_bf = glcu_forward(feat, params_bf16)
    jax.block_until_ready((out_bf, task_bf))
    assert jnp.allclose(out_bf, ref_out, atol=2e-3), "sigmoid output mismatch (bf16)"
    assert jnp.allclose(task_bf, ref_task, atol=2e-3), "task_feat mismatch (bf16)"

    print("KERNEL_OK")
</pallas_src>

<mosaic_0001>
module attributes {stable_mosaic.version = 11 : i64} {
  func.func @glcu_kernel(%arg0: i32, %arg1: memref<8x32xf32, #tpu.memory_space<vmem>>, %arg2: memref<32x32xf32, #tpu.memory_space<vmem>>, %arg3: memref<1x32xf32, #tpu.memory_space<vmem>>, %arg4: memref<32x8xf32, #tpu.memory_space<vmem>>, %arg5: memref<1x8xf32, #tpu.memory_space<vmem>>, %arg6: memref<8x32xf32, #tpu.memory_space<vmem>>, %arg7: memref<1x32xf32, #tpu.memory_space<vmem>>, %arg8: memref<32x32xf32, #tpu.memory_space<vmem>>, %arg9: memref<1x32xf32, #tpu.memory_space<vmem>>, %arg10: memref<8x32xf32, #tpu.memory_space<vmem>>, %arg11: memref<8x8xf32, #tpu.memory_space<vmem>>) attributes {dimension_semantics = [#tpu.dimension_semantics<parallel>], iteration_bounds = array<i64: 1>, scalar_prefetch = 0 : i64, scratch_operands = 0 : i64, tpu.core_type = #tpu.core_type<tc>, window_params = [{transform_indices = @transform_0, window_bounds = array<i64: 8, 32>}, {pipeline_mode = #tpu.pipeline_mode<synchronous>, transform_indices = @transform_1, window_bounds = array<i64: 32, 32>}, {pipeline_mode = #tpu.pipeline_mode<synchronous>, transform_indices = @transform_2, window_bounds = array<i64: 1, 32>}, {pipeline_mode = #tpu.pipeline_mode<synchronous>, transform_indices = @transform_3, window_bounds = array<i64: 32, 8>}, {pipeline_mode = #tpu.pipeline_mode<synchronous>, transform_indices = @transform_4, window_bounds = array<i64: 1, 8>}, {pipeline_mode = #tpu.pipeline_mode<synchronous>, transform_indices = @transform_5, window_bounds = array<i64: 8, 32>}, {pipeline_mode = #tpu.pipeline_mode<synchronous>, transform_indices = @transform_6, window_bounds = array<i64: 1, 32>}, {pipeline_mode = #tpu.pipeline_mode<synchronous>, transform_indices = @transform_7, window_bounds = array<i64: 32, 32>}, {pipeline_mode = #tpu.pipeline_mode<synchronous>, transform_indices = @transform_8, window_bounds = array<i64: 1, 32>}, {transform_indices = @transform_9, window_bounds = array<i64: 8, 32>}, {transform_indices = @transform_10, window_bounds = array<i64: 8, 8>}]} {
    %c0 = arith.constant 0 : index
    %c0_0 = arith.constant 0 : index
    %0 = vector.load %arg1[%c0, %c0_0] : memref<8x32xf32, #tpu.memory_space<vmem>>, vector<8x32xf32>
    %c0_1 = arith.constant 0 : index
    %c0_2 = arith.constant 0 : index
    %1 = vector.load %arg2[%c0_1, %c0_2] : memref<32x32xf32, #tpu.memory_space<vmem>>, vector<32x32xf32>
    %cst = arith.constant dense<0.000000e+00> : vector<8x32xf32>
    %2 = tpu.matmul %0, %1, %cst {dimension_numbers = #tpu.dot_dimension_numbers<[1], [0], [0], [1], [0, 0, 1, 1], [], []>} : vector<8x32xf32>, vector<32x32xf32>, vector<8x32xf32> -> vector<8x32xf32>
    %c0_3 = arith.constant 0 : index
    %c0_4 = arith.constant 0 : index
    %3 = vector.load %arg3[%c0_3, %c0_4] : memref<1x32xf32, #tpu.memory_space<vmem>>, vector<1x32xf32>
    %4 = vector.broadcast %3 : vector<1x32xf32> to vector<8x32xf32>
    %5 = arith.addf %2, %4 : vector<8x32xf32>
    %cst_5 = arith.constant 0.000000e+00 : f32
    %6 = vector.broadcast %cst_5 : f32 to vector<8x32xf32>
    %7 = arith.maximumf %5, %6 : vector<8x32xf32>
    %c0_6 = arith.constant 0 : index
    %c0_7 = arith.constant 0 : index
    %8 = vector.load %arg4[%c0_6, %c0_7] : memref<32x8xf32, #tpu.memory_space<vmem>>, vector<32x8xf32>
    %cst_8 = arith.constant dense<0.000000e+00> : vector<8x8xf32>
    %9 = tpu.matmul %7, %8, %cst_8 {dimension_numbers = #tpu.dot_dimension_numbers<[1], [0], [0], [1], [0, 0, 1, 1], [], []>} : vector<8x32xf32>, vector<32x8xf32>, vector<8x8xf32> -> vector<8x8xf32>
    %c0_9 = arith.constant 0 : index
    %c0_10 = arith.constant 0 : index
    %10 = vector.load %arg5[%c0_9, %c0_10] : memref<1x8xf32, #tpu.memory_space<vmem>>, vector<1x8xf32>
    %11 = vector.broadcast %10 : vector<1x8xf32> to vector<8x8xf32>
    %12 = arith.addf %9, %11 : vector<8x8xf32>
    %c0_11 = arith.constant 0 : index
    %c0_12 = arith.constant 0 : index
    %13 = vector.load %arg11[%c0_11, %c0_12] : memref<8x8xf32, #tpu.memory_space<vmem>>, vector<8x8xf32>
    tpu.vector_store %arg11[%c0_11, %c0_12], %12 {strides = array<i32>} : memref<8x8xf32, #tpu.memory_space<vmem>>, vector<8x8xf32>,
    %cst_13 = arith.constant dense<0xFF800000> : vector<8xf32>
    %14 = vector.multi_reduction <maximumf>, %12, %cst_13 [1] : vector<8x8xf32> to vector<8xf32>
    %15 = vector.shape_cast %14 : vector<8xf32> to vector<8x1xf32>
    %16 = vector.broadcast %15 : vector<8x1xf32> to vector<8x8xf32>
    %17 = arith.subf %12, %16 : vector<8x8xf32>
    %18 = math.exp %17 : vector<8x8xf32>
    %cst_14 = arith.constant dense<0.000000e+00> : vector<8xf32>
    %19 = vector.multi_reduction <add>, %18, %cst_14 [1] : vector<8x8xf32> to vector<8xf32>
    %20 = vector.shape_cast %19 : vector<8xf32> to vector<8x1xf32>
    %21 = vector.broadcast %20 : vector<8x1xf32> to vector<8x8xf32>
    %22 = arith.divf %18, %21 : vector<8x8xf32>
    %c0_15 = arith.constant 0 : index
    %c0_16 = arith.constant 0 : index
    %23 = vector.load %arg6[%c0_15, %c0_16] : memref<8x32xf32, #tpu.memory_space<vmem>>, vector<8x32xf32>
    %cst_17 = arith.constant dense<0.000000e+00> : vector<8x32xf32>
    %24 = tpu.matmul %22, %23, %cst_17 {dimension_numbers = #tpu.dot_dimension_numbers<[1], [0], [0], [1], [0, 0, 1, 1], [], []>} : vector<8x8xf32>, vector<8x32xf32>, vector<8x32xf32> -> vector<8x32xf32>
    %c0_18 = arith.constant 0 : index
    %c0_19 = arith.constant 0 : index
    %25 = vector.load %arg7[%c0_18, %c0_19] : memref<1x32xf32, #tpu.memory_space<vmem>>, vector<1x32xf32>
    %26 = vector.broadcast %25 : vector<1x32xf32> to vector<8x32xf32>
    %27 = arith.addf %24, %26 : vector<8x32xf32>
    %cst_20 = arith.constant 0.000000e+00 : f32
    %28 = vector.broadcast %cst_20 : f32 to vector<8x32xf32>
    %29 = arith.maximumf %27, %28 : vector<8x32xf32>
    %c0_21 = arith.constant 0 : index
    %c0_22 = arith.constant 0 : index
    %30 = vector.load %arg8[%c0_21, %c0_22] : memref<32x32xf32, #tpu.memory_space<vmem>>, vector<32x32xf32>
    %cst_23 = arith.constant dense<0.000000e+00> : vector<8x32xf32>
    %31 = tpu.matmul %29, %30, %cst_23 {dimension_numbers = #tpu.dot_dimension_numbers<[1], [0], [0], [1], [0, 0, 1, 1], [], []>} : vector<8x32xf32>, vector<32x32xf32>, vector<8x32xf32> -> vector<8x32xf32>
    %c0_24 = arith.constant 0 : index
    %c0_25 = arith.constant 0 : index
    %32 = vector.load %arg9[%c0_24, %c0_25] : memref<1x32xf32, #tpu.memory_space<vmem>>, vector<1x32xf32>
    %33 = vector.broadcast %32 : vector<1x32xf32> to vector<8x32xf32>
    %34 = arith.addf %31, %33 : vector<8x32xf32>
    %cst_26 = arith.constant 5.000000e-01 : f32
    %35 = vector.broadcast %cst_26 : f32 to vector<8x32xf32>
    %36 = arith.mulf %35, %34 : vector<8x32xf32>
    %37 = math.tanh %36 : vector<8x32xf32>
    %cst_27 = arith.constant 1.000000e+00 : f32
    %38 = vector.broadcast %cst_27 : f32 to vector<8x32xf32>
    %39 = arith.addf %37, %38 : vector<8x32xf32>
    %cst_28 = arith.constant 5.000000e-01 : f32
    %40 = vector.broadcast %cst_28 : f32 to vector<8x32xf32>
    %41 = arith.mulf %40, %39 : vector<8x32xf32>
    %c0_29 = arith.constant 0 : index
    %c0_30 = arith.constant 0 : index
    %42 = vector.load %arg10[%c0_29, %c0_30] : memref<8x32xf32, #tpu.memory_space<vmem>>, vector<8x32xf32>
    tpu.vector_store %arg10[%c0_29, %c0_30], %41 {strides = array<i32>} : memref<8x32xf32, #tpu.memory_space<vmem>>, vector<8x32xf32>,
    return
  }
  func.func @transform_0(%arg0: i32) -> (i32, i32) {
    %c0_i32 = arith.constant 0 : i32
    %c0_i32_0 = arith.constant 0 : i32
    return %arg0, %c0_i32 : i32, i32
  }
  func.func @transform_1(%arg0: i32) -> (i32, i32) {
    %c0_i32 = arith.constant 0 : i32
    %c0_i32_0 = arith.constant 0 : i32
    %c0_i32_1 = arith.constant 0 : i32
    return %c0_i32, %c0_i32_0 : i32, i32
  }
  func.func @transform_2(%arg0: i32) -> (i32, i32) {
    %c0_i32 = arith.constant 0 : i32
    %c0_i32_0 = arith.constant 0 : i32
    %c0_i32_1 = arith.constant 0 : i32
    return %c0_i32, %c0_i32_0 : i32, i32
  }
  func.func @transform_3(%arg0: i32) -> (i32, i32) {
    %c0_i32 = arith.constant 0 : i32
    %c0_i32_0 = arith.constant 0 : i32
    %c0_i32_1 = arith.constant 0 : i32
    return %c0_i32, %c0_i32_0 : i32, i32
  }
  func.func @transform_4(%arg0: i32) -> (i32, i32) {
    %c0_i32 = arith.constant 0 : i32
    %c0_i32_0 = arith.constant 0 : i32
    %c0_i32_1 = arith.constant 0 : i32
    return %c0_i32, %c0_i32_0 : i32, i32
  }
  func.func @transform_5(%arg0: i32) -> (i32, i32) {
    %c0_i32 = arith.constant 0 : i32
    %c0_i32_0 = arith.constant 0 : i32
    %c0_i32_1 = arith.constant 0 : i32
    return %c0_i32, %c0_i32_0 : i32, i32
  }
  func.func @transform_6(%arg0: i32) -> (i32, i32) {
    %c0_i32 = arith.constant 0 : i32
    %c0_i32_0 = arith.constant 0 : i32
    %c0_i32_1 = arith.constant 0 : i32
    return %c0_i32, %c0_i32_0 : i32, i32
  }
  func.func @transform_7(%arg0: i32) -> (i32, i32) {
    %c0_i32 = arith.constant 0 : i32
    %c0_i32_0 = arith.constant 0 : i32
    %c0_i32_1 = arith.constant 0 : i32
    return %c0_i32, %c0_i32_0 : i32, i32
  }
  func.func @transform_8(%arg0: i32) -> (i32, i32) {
    %c0_i32 = arith.constant 0 : i32
    %c0_i32_0 = arith.constant 0 : i32
    %c0_i32_1 = arith.constant 0 : i32
    return %c0_i32, %c0_i32_0 : i32, i32
  }
  func.func @transform_9(%arg0: i32) -> (i32, i32) {
    %c0_i32 = arith.constant 0 : i32
    %c0_i32_0 = arith.constant 0 : i32
    return %arg0, %c0_i32 : i32, i32
  }
  func.func @transform_10(%arg0: i32) -> (i32, i32) {
    %c0_i32 = arith.constant 0 : i32
    %c0_i32_0 = arith.constant 0 : i32
    return %arg0, %c0_i32 : i32, i32
  }
}

module attributes {stable_mosaic.version = 11 : i64} {
  func.func @glcu_kernel(%arg0: i32, %arg1: memref<8x32xf32, #tpu.memory_space<vmem>>, %arg2: memref<32x32xf32, #tpu.memory_space<vmem>>, %arg3: memref<1x32xf32, #tpu.memory_space<vmem>>, %arg4: memref<32x8xf32, #tpu.memory_space<vmem>>, %arg5: memref<1x8xf32, #tpu.memory_space<vmem>>, %arg6: memref<8x32xf32, #tpu.memory_space<vmem>>, %arg7: memref<1x32xf32, #tpu.memory_space<vmem>>, %arg8: memref<32x32xf32, #tpu.memory_space<vmem>>, %arg9: memref<1x32xf32, #tpu.memory_space<vmem>>, %arg10: memref<8x32xf32, #tpu.memory_space<vmem>>, %arg11: memref<8x8xf32, #tpu.memory_space<vmem>>) attributes {dimension_semantics = [#tpu.dimension_semantics<parallel>], iteration_bounds = array<i64: 1>, scalar_prefetch = 0 : i64, scratch_operands = 0 : i64, tpu.core_type = #tpu.core_type<tc>, window_params = [{transform_indices = @transform_0, window_bounds = array<i64: 8, 32>}, {pipeline_mode = #tpu.pipeline_mode<synchronous>, transform_indices = @transform_1, window_bounds = array<i64: 32, 32>}, {pipeline_mode = #tpu.pipeline_mode<synchronous>, transform_indices = @transform_2, window_bounds = array<i64: 1, 32>}, {pipeline_mode = #tpu.pipeline_mode<synchronous>, transform_indices = @transform_3, window_bounds = array<i64: 32, 8>}, {pipeline_mode = #tpu.pipeline_mode<synchronous>, transform_indices = @transform_4, window_bounds = array<i64: 1, 8>}, {pipeline_mode = #tpu.pipeline_mode<synchronous>, transform_indices = @transform_5, window_bounds = array<i64: 8, 32>}, {pipeline_mode = #tpu.pipeline_mode<synchronous>, transform_indices = @transform_6, window_bounds = array<i64: 1, 32>}, {pipeline_mode = #tpu.pipeline_mode<synchronous>, transform_indices = @transform_7, window_bounds = array<i64: 32, 32>}, {pipeline_mode = #tpu.pipeline_mode<synchronous>, transform_indices = @transform_8, window_bounds = array<i64: 1, 32>}, {transform_indices = @transform_9, window_bounds = array<i64: 8, 32>}, {transform_indices = @transform_10, window_bounds = array<i64: 8, 8>}]} {
    %c0 = arith.constant 0 : index
    %c0_0 = arith.constant 0 : index
    %0 = vector.load %arg1[%c0, %c0_0] : memref<8x32xf32, #tpu.memory_space<vmem>>, vector<8x32xf32>
    %c0_1 = arith.constant 0 : index
    %c0_2 = arith.constant 0 : index
    %1 = vector.load %arg2[%c0_1, %c0_2] : memref<32x32xf32, #tpu.memory_space<vmem>>, vector<32x32xf32>
    %cst = arith.constant dense<0.000000e+00> : vector<8x32xf32>
    %2 = tpu.matmul %0, %1, %cst {dimension_numbers = #tpu.dot_dimension_numbers<[1], [0], [0], [1], [0, 0, 1, 1], [], []>} : vector<8x32xf32>, vector<32x32xf32>, vector<8x32xf32> -> vector<8x32xf32>
    %c0_3 = arith.constant 0 : index
    %c0_4 = arith.constant 0 : index
    %3 = vector.load %arg3[%c0_3, %c0_4] : memref<1x32xf32, #tpu.memory_space<vmem>>, vector<1x32xf32>
    %4 = vector.broadcast %3 : vector<1x32xf32> to vector<8x32xf32>
    %5 = arith.addf %2, %4 : vector<8x32xf32>
    %cst_5 = arith.constant 0.000000e+00 : f32
    %6 = vector.broadcast %cst_5 : f32 to vector<8x32xf32>
    %7 = arith.maximumf %5, %6 : vector<8x32xf32>
    %c0_6 = arith.constant 0 : index
    %c0_7 = arith.constant 0 : index
    %8 = vector.load %arg4[%c0_6, %c0_7] : memref<32x8xf32, #tpu.memory_space<vmem>>, vector<32x8xf32>
    %cst_8 = arith.constant dense<0.000000e+00> : vector<8x8xf32>
    %9 = tpu.matmul %7, %8, %cst_8 {dimension_numbers = #tpu.dot_dimension_numbers<[1], [0], [0], [1], [0, 0, 1, 1], [], []>} : vector<8x32xf32>, vector<32x8xf32>, vector<8x8xf32> -> vector<8x8xf32>
    %c0_9 = arith.constant 0 : index
    %c0_10 = arith.constant 0 : index
    %10 = vector.load %arg5[%c0_9, %c0_10] : memref<1x8xf32, #tpu.memory_space<vmem>>, vector<1x8xf32>
    %11 = vector.broadcast %10 : vector<1x8xf32> to vector<8x8xf32>
    %12 = arith.addf %9, %11 : vector<8x8xf32>
    %c0_11 = arith.constant 0 : index
    %c0_12 = arith.constant 0 : index
    %13 = vector.load %arg11[%c0_11, %c0_12] : memref<8x8xf32, #tpu.memory_space<vmem>>, vector<8x8xf32>
    tpu.vector_store %arg11[%c0_11, %c0_12], %12 {strides = array<i32>} : memref<8x8xf32, #tpu.memory_space<vmem>>, vector<8x8xf32>,
    %cst_13 = arith.constant dense<0xFF800000> : vector<8xf32>
    %14 = vector.multi_reduction <maximumf>, %12, %cst_13 [1] : vector<8x8xf32> to vector<8xf32>
    %15 = vector.shape_cast %14 : vector<8xf32> to vector<8x1xf32>
    %16 = vector.broadcast %15 : vector<8x1xf32> to vector<8x8xf32>
    %17 = arith.subf %12, %16 : vector<8x8xf32>
    %18 = math.exp %17 : vector<8x8xf32>
    %cst_14 = arith.constant dense<0.000000e+00> : vector<8xf32>
    %19 = vector.multi_reduction <add>, %18, %cst_14 [1] : vector<8x8xf32> to vector<8xf32>
    %20 = vector.shape_cast %19 : vector<8xf32> to vector<8x1xf32>
    %21 = vector.broadcast %20 : vector<8x1xf32> to vector<8x8xf32>
    %22 = arith.divf %18, %21 : vector<8x8xf32>
    %c0_15 = arith.constant 0 : index
    %c0_16 = arith.constant 0 : index
    %23 = vector.load %arg6[%c0_15, %c0_16] : memref<8x32xf32, #tpu.memory_space<vmem>>, vector<8x32xf32>
    %cst_17 = arith.constant dense<0.000000e+00> : vector<8x32xf32>
    %24 = tpu.matmul %22, %23, %cst_17 {dimension_numbers = #tpu.dot_dimension_numbers<[1], [0], [0], [1], [0, 0, 1, 1], [], []>} : vector<8x8xf32>, vector<8x32xf32>, vector<8x32xf32> -> vector<8x32xf32>
    %c0_18 = arith.constant 0 : index
    %c0_19 = arith.constant 0 : index
    %25 = vector.load %arg7[%c0_18, %c0_19] : memref<1x32xf32, #tpu.memory_space<vmem>>, vector<1x32xf32>
    %26 = vector.broadcast %25 : vector<1x32xf32> to vector<8x32xf32>
    %27 = arith.addf %24, %26 : vector<8x32xf32>
    %cst_20 = arith.constant 0.000000e+00 : f32
    %28 = vector.broadcast %cst_20 : f32 to vector<8x32xf32>
    %29 = arith.maximumf %27, %28 : vector<8x32xf32>
    %c0_21 = arith.constant 0 : index
    %c0_22 = arith.constant 0 : index
    %30 = vector.load %arg8[%c0_21, %c0_22] : memref<32x32xf32, #tpu.memory_space<vmem>>, vector<32x32xf32>
    %cst_23 = arith.constant dense<0.000000e+00> : vector<8x32xf32>
    %31 = tpu.matmul %29, %30, %cst_23 {dimension_numbers = #tpu.dot_dimension_numbers<[1], [0], [0], [1], [0, 0, 1, 1], [], []>} : vector<8x32xf32>, vector<32x32xf32>, vector<8x32xf32> -> vector<8x32xf32>
    %c0_24 = arith.constant 0 : index
    %c0_25 = arith.constant 0 : index
    %32 = vector.load %arg9[%c0_24, %c0_25] : memref<1x32xf32, #tpu.memory_space<vmem>>, vector<1x32xf32>
    %33 = vector.broadcast %32 : vector<1x32xf32> to vector<8x32xf32>
    %34 = arith.addf %31, %33 : vector<8x32xf32>
    %cst_26 = arith.constant 5.000000e-01 : f32
    %35 = vector.broadcast %cst_26 : f32 to vector<8x32xf32>
    %36 = arith.mulf %35, %34 : vector<8x32xf32>
    %37 = math.tanh %36 : vector<8x32xf32>
    %cst_27 = arith.constant 1.000000e+00 : f32
    %38 = vector.broadcast %cst_27 : f32 to vector<8x32xf32>
    %39 = arith.addf %37, %38 : vector<8x32xf32>
    %cst_28 = arith.constant 5.000000e-01 : f32
    %40 = vector.broadcast %cst_28 : f32 to vector<8x32xf32>
    %41 = arith.mulf %40, %39 : vector<8x32xf32>
    %c0_29 = arith.constant 0 : index
    %c0_30 = arith.constant 0 : index
    %42 = vector.load %arg10[%c0_29, %c0_30] : memref<8x32xf32, #tpu.memory_space<vmem>>, vector<8x32xf32>
    tpu.vector_store %arg10[%c0_29, %c0_30], %41 {strides = array<i32>} : memref<8x32xf32, #tpu.memory_space<vmem>>, vector<8x32xf32>,
    return
  }
  func.func @transform_0(%arg0: i32) -> (i32, i32) {
    %c0_i32 = arith.constant 0 : i32
    %c0_i32_0 = arith.constant 0 : i32
    return %arg0, %c0_i32 : i32, i32
  }
  func.func @transform_1(%arg0: i32) -> (i32, i32) {
    %c0_i32 = arith.constant 0 : i32
    %c0_i32_0 = arith.constant 0 : i32
    %c0_i32_1 = arith.constant 0 : i32
    return %c0_i32, %c0_i32_0 : i32, i32
  }
  func.func @transform_2(%arg0: i32) -> (i32, i32) {
    %c0_i32 = arith.constant 0 : i32
    %c0_i32_0 = arith.constant 0 : i32
    %c0_i32_1 = arith.constant 0 : i32
    return %c0_i32, %c0_i32_0 : i32, i32
  }
  func.func @transform_3(%arg0: i32) -> (i32, i32) {
    %c0_i32 = arith.constant 0 : i32
    %c0_i32_0 = arith.constant 0 : i32
    %c0_i32_1 = arith.constant 0 : i32
    return %c0_i32, %c0_i32_0 : i32, i32
  }
  func.func @transform_4(%arg0: i32) -> (i32, i32) {
    %c0_i32 = arith.constant 0 : i32
    %c0_i32_0 = arith.constant 0 : i32
    %c0_i32_1 = arith.constant 0 : i32
    return %c0_i32, %c0_i32_0 : i32, i32
  }
  func.func @transform_5(%arg0: i32) -> (i32, i32) {
    %c0_i32 = arith.constant 0 : i32
    %c0_i32_0 = arith.constant 0 : i32
    %c0_i32_1 = arith.constant 0 : i32
    return %c0_i32, %c0_i32_0 : i32, i32
  }
  func.func @transform_6(%arg0: i32) -> (i32, i32) {
    %c0_i32 = arith.constant 0 : i32
    %c0_i32_0 = arith.constant 0 : i32
    %c0_i32_1 = arith.constant 0 : i32
    return %c0_i32, %c0_i32_0 : i32, i32
  }
  func.func @transform_7(%arg0: i32) -> (i32, i32) {
    %c0_i32 = arith.constant 0 : i32
    %c0_i32_0 = arith.constant 0 : i32
    %c0_i32_1 = arith.constant 0 : i32
    return %c0_i32, %c0_i32_0 : i32, i32
  }
  func.func @transform_8(%arg0: i32) -> (i32, i32) {
    %c0_i32 = arith.constant 0 : i32
    %c0_i32_0 = arith.constant 0 : i32
    %c0_i32_1 = arith.constant 0 : i32
    return %c0_i32, %c0_i32_0 : i32, i32
  }
  func.func @transform_9(%arg0: i32) -> (i32, i32) {
    %c0_i32 = arith.constant 0 : i32
    %c0_i32_0 = arith.constant 0 : i32
    return %arg0, %c0_i32 : i32, i32
  }
  func.func @transform_10(%arg0: i32) -> (i32, i32) {
    %c0_i32 = arith.constant 0 : i32
    %c0_i32_0 = arith.constant 0 : i32
    return %arg0, %c0_i32 : i32, i32
  }
}

</mosaic_0001>

<bundles_post_ra>
// kernel: tpu_custom_call.1
= control target key start
LH: loop header
LB: loop body
LE: loop exit
PB: predicated region body
PF: predicated region fallthrough
CT: control target
= control target key end

     0   :  { %16 = vsyncpa [#allocation3], 0  ;;  %s755_s0 = inlined_call_operand.vmem [shape: f32[8,32], index: 0, kind: input, shape index: {}]   ;;  %s756_s1 = inlined_call_operand.vmem [shape: f32[32,32], index: 1, kind: input, shape index: {}]   ;;  %s757_s2 = inlined_call_operand.vmem [shape: f32[1,32], index: 2, kind: input, shape index: {}]   ;;  %s758_s3 = inlined_call_operand.vmem [shape: f32[32,8], index: 3, kind: input, shape index: {}]   ;;  %s759_s4 = inlined_call_operand.hbm [shape: f32[1,8], index: 4, kind: input, shape index: {}]   ;;  %s760_s5 = inlined_call_operand.vmem [shape: f32[8,32], index: 5, kind: input, shape index: {}]   ;;  %s761_s6 = inlined_call_operand.vmem [shape: f32[1,32], index: 6, kind: input, shape index: {}]   ;;  %s762_s7 = inlined_call_operand.hbm [shape: f32[32,32], index: 7, kind: input, shape index: {}]   ;;  %s763_s8 = inlined_call_operand.vmem [shape: f32[1,32], index: 8, kind: input, shape index: {}]   ;;  %s764_s9 = inlined_call_operand.hbm [shape: f32[8,32], index: 9, kind: output, shape index: {0}]   ;;  %s765_s10 = inlined_call_operand.hbm [shape: f32[8,8], index: 10, kind: output, shape index: {1}]  }
   0x1   :  { %17 = vsyncpa [#allocation6], 0 }
   0x2   :  { %18 = vsyncpa [#allocation4], 0 }
   0x3   :  { %19 = vsyncpa [#allocation9], 0  ;;  %s612_s13 = smov [#allocation2]   ;;  %s613_s15 = smov [#allocation5]  }
   0x4   :  { %s34_s14 = sshll.u32 %s612_s13, 4  ;;  %s47_s16 = sshll.u32 %s613_s15, 4  ;;  %s35_s14 = int_to_ptr.vmem [resolvable:$true] %s34_s14  ;;  %s48_s16 = int_to_ptr.vmem [resolvable:$true] %s47_s16 }
   0x5   :  { %s532_s17 = scalar_lea.vmem %s35_s14, 16  ;;  %s536_s18 = scalar_lea.vmem %s35_s14, 32 }
   0x6   :  { %p533_p0 = scmp.ne.s32.totalorder %s35_s14, %s532_s17  ;;  %p537_p1 = scmp.lt.s32.totalorder %s35_s14, %s35_s14 }
   0x7   :  { %p538_p2 = scmp.lt.s32.totalorder %s536_s18, %s532_s17 }
   0x9   :  { %p539_p3 = por %p538_p2, %p537_p1 }
   0xb   :  { %p540_p4 = pnand %p539_p3, %p533_p0 }
   0xd   :  { %543 = shalt.err (!%p540_p4)
}
   0xe   :  { %37 = dma.hbm_to_vmem [thread:$0]  %s759_s4, 16, %s35_s14, [#allocation3]  }
   0xf   :  { %s552_s21 = scalar_lea.vmem %s48_s16, 512  ;;  %p557_p6 = scmp.lt.s32.totalorder %s48_s16, %s48_s16 }
  0x10   :  { %p553_p5 = scmp.ne.s32.totalorder %s48_s16, %s552_s21  ;;  %p558_p7 = scmp.lt.s32.totalorder %s552_s21, %s552_s21 }
  0x12   :  { %p559_p8 = por %p558_p7, %p557_p6 }
  0x14   :  { %p560_p9 = pnand %p559_p8, %p553_p5 }
  0x16   :  { %563 = shalt.err (!%p560_p9)
}
  0x17   :  { %s614_s22 = smov 128   ;;  %s615_s23 = smov 8  }
  0x18   :  { %53 = dma.hbm_to_vmem [thread:$0]  %s762_s7, 512, %s48_s16, [#allocation6], %s614_s22, %s614_s22, %s615_s23  }
  0x19   :  { %604 = dma.done.wait [#allocation3], 16  }
  0x1a   :  { %605 = vsyncadd [#allocation3], 4294967280 }
  0x1b   :  { %606 = dma.done.wait [#allocation6], 512  }
  0x1c   :  { %607 = vsyncadd [#allocation6], 4294966784  ;;  %v616_v0 = vmov 0.0   ;;  %vm617_vm0 = vmmov 0   ;;  %v66_v1 = vld [vmem:[%s756_s1 + $0x18] sm:$0xff]  ;;  %v65_v2 = vld [vmem:[%s756_s1 + $0x10] sm:$0xff] }
  0x1d   :  { %472 = vmatprep.subr.mxu0 %v616_v0  ;;  %480 = vmatprep.mubr.msk.f32.mxu0 %vm617_vm0, %v616_v0  ;;  %v152_v3 = vld [vmem:[%s758_s3 + $0x18] sm:$0xff]  ;;  %v64_v4 = vld [vmem:[%s756_s1 + $0x8] sm:$0xff]  ;;  %v63_v5 = vld [vmem:[%s756_s1] sm:$0xff]  ;;  %vm74_vm1 = vcmask 261120   ;;  %vm233_vm2 = vcmask 64512   ;;  %s618_s23 = smov [#allocation8]  }
  0x1e   :  { %483 = vmatprep.subr.mxu1 %v616_v0  ;;  %491 = vmatprep.mubr.msk.f32.mxu1 %vm617_vm0, %v616_v0  ;;  %v62_v6 = vld [vmem:[%s755_s0] sm:$0xff]  ;;  %v151_v7 = vld [vmem:[%s758_s3 + $0x10] sm:$0xff]  ;;  %v150_v8 = vld [vmem:[%s758_s3 + $0x8] sm:$0xff]  ;;  %s433_s24 = sshll.u32 %s618_s23, 4  ;;  %s434_s24 = int_to_ptr.vmem [resolvable:$true] %s433_s24 }
  0x1f   :  { %473 = vmatpush3.msra.mxu0 %v66_v1  ;;  %484 = vmatpush3.msra.mxu1 %v152_v3  ;;  %v149_v9 = vld [vmem:[%s758_s3] sm:$0xff]  ;;  %v330_v30 = vld [vmem:[#allocation5 + $0x10] sm:$0xff]  ;;  %v329_v31 = vld [vmem:[#allocation5 + $0x8] sm:$0xff]  ;;  %s564_s25 = scalar_lea.vmem %s434_s24, 128  ;;  %p569_p11 = scmp.lt.s32.totalorder %s434_s24, %s434_s24 }
  0x20   :  { %474 = vmatprep.subr.mxu0 %v616_v0  ;;  %485 = vmatprep.subr.mxu1 %v616_v0  ;;  %v447_v10 = vld [vmem:[%s757_s2] ss:$0 sm:$0xff]  ;;  %v328_v32 = vld [vmem:[#allocation5] sm:$0xff]  ;;  %p565_p10 = scmp.ne.s32.totalorder %s434_s24, %s564_s25  ;;  %p570_p12 = scmp.lt.s32.totalorder %s564_s25, %s564_s25 }
  0x21   :  { %475 = vmatpush3.msra.mxu0 %v65_v2  ;;  %486 = vmatpush3.msra.mxu1 %v151_v7  ;;  %v449_v15 = vld [vmem:[#allocation2] ss:$0 sm:$0xff] }
  0x22   :  { %476 = vmatprep.subr.mxu0 %v616_v0  ;;  %487 = vmatprep.subr.mxu1 %v616_v0  ;;  %v246_v25 = vld [vmem:[%s760_s5] sm:$0xff]  ;;  %p571_p13 = por %p570_p12, %p569_p11 }
  0x23   :  { %477 = vmatpush3.msra.mxu0 %v64_v4  ;;  %488 = vmatpush3.msra.mxu1 %v150_v8  ;;  %v331_v26 = vld [vmem:[#allocation5 + $0x18] sm:$0xff] }
  0x24   :  { %478 = vmatprep.subr.mxu0 %v616_v0  ;;  %489 = vmatprep.subr.mxu1 %v616_v0  ;;  %v451_v33 = vld [vmem:[%s761_s6] ss:$0 sm:$0xff]  ;;  %p572_p0 = pnand %p571_p13, %p565_p10 }
  0x25   :  { %479 = vmatpush3.msra.mxu0 %v63_v5  ;;  %490 = vmatpush3.msra.mxu1 %v149_v9 }
  0x26   :  { %481 = vmatmul.mubr.msk.f32.vlgmr.msra.gmra.mxu0 %vm74_vm1, %v62_v6  ;;  %494 = vmatprep.subr.mxu0 %v616_v0 }
  0x27   :  { %496 = vmatprep.mubr.msk.f32.mxu0 %vm617_vm0, %v616_v0  ;;  %499 = vmatprep.subr.mxu1 %v616_v0 }
  0x28   :  { %495 = vmatpush3.msra.mxu0 %v246_v25 }
  0xe6   :  { %v144_v11 = vpop.f32.mrf.mxu0 }
  0xe7   :  { %v145_v12 = vadd.f32 %v447_v10, %v144_v11 }
  0xe8   :  { %v482_v13 = vpop.f32.mrf.mxu0 }
  0xe9   :  { %v148_v14 = vmax.f32 %v145_v12, 0.0 }
  0xeb   :  { %492 = vmatmul.mubr.msk.f32.vlgmr.msra.gmra.mxu1 %vm74_vm1, %v148_v14 }
  0xec   :  { %507 = vmatprep.mubr.msk.f32.mxu1 %vm617_vm0, %v616_v0  ;;  %500 = vmatpush3.msra.mxu1 %v331_v26 }
  0xed   :  { %501 = vmatprep.subr.mxu1 %v616_v0 }
  0xee   :  { %502 = vmatpush3.msra.mxu1 %v330_v30 }
  0xef   :  { %503 = vmatprep.subr.mxu1 %v616_v0 }
  0xf0   :  { %504 = vmatpush3.msra.mxu1 %v329_v31 }
  0xf1   :  { %505 = vmatprep.subr.mxu1 %v616_v0 }
  0xf2   :  { %506 = vmatpush3.msra.mxu1 %v328_v32 }
 0x1ab   :  { %v229_v16 = vpop.f32.mrf.mxu1 }
 0x1ac   :  { %v230_v17 = vadd.f32 %v449_v15, %v229_v16 }
 0x1ad   :  { %v493_v18 = vpop.f32.mrf.mxu1 }
 0x1ae   :  { %v235_v19 = vsel %vm233_vm2, %v230_v17, -inf  ;;  %234 = vst.msk [vmem:[#allocation8] sm:$0xff] %vm233_vm2, %v230_v17 }
 0x1af   :  { %236 = vmax.xlane.f32.xlu0 %v235_v19 }
 0x238   :  { %v237_v20 = vpop.xlane.xlu0 %236 }
 0x239   :  { %v238_v21 = vsub.f32 %v230_v17, %v237_v20 }
 0x23b   :  { %v239_v22 = vmul.f32 1.442695, %v238_v21 }
 0x23d   :  { %518 = vpow2.f32 %v239_v22 }
 0x24a   :  { %v519_v23 = vpop.eup %518 }
 0x24b   :  { %v241_v24 = vsel %vm233_vm2, %v519_v23, 0.0 }
 0x24c   :  { %242 = vadd.xlane.f32.xlu0 %v241_v24 }
 0x2d5   :  { %v243_v27 = vpop.xlane.xlu0 %242 }
 0x2d6   :  { %520 = vrcp.f32 %v243_v27 }
 0x2e3   :  { %v521_v28 = vpop.eup %520 }
 0x2e4   :  { %v245_v29 = vmul.f32 %v521_v28, %v519_v23 }
 0x2e6   :  { %497 = vmatmul.mubr.msk.f32.vlgmr.msra.gmra.mxu0 %vm233_vm2, %v245_v29 }
 0x3a6   :  { %v323_v34 = vpop.f32.mrf.mxu0 }
 0x3a7   :  { %v324_v35 = vadd.f32 %v451_v33, %v323_v34 }
 0x3a8   :  { %v498_v36 = vpop.f32.mrf.mxu0 }
 0x3a9   :  { %v327_v37 = vmax.f32 %v324_v35, 0.0 }
 0x3ab   :  { %508 = vmatmul.mubr.msk.f32.vlgmr.msra.gmra.mxu1 %vm74_vm1, %v327_v37 }
 0x3ac   :  { %575 = shalt.err (!%p572_p0)
}
 0x3ad   :  { %436 = dma.vmem_to_hbm [thread:$0]  %s434_s24, 128, %s765_s10, [#allocation9]   ;;  %v453_v38 = vld [vmem:[%s763_s8] ss:$0 sm:$0xff] }
 0x3ae   :  { %s619_s27 = smov [#allocation7]  }
 0x3af   :  { %s423_s28 = sshll.u32 %s619_s27, 4  ;;  %s424_s28 = int_to_ptr.vmem [resolvable:$true] %s423_s28 }
 0x3b0   :  { %s584_s29 = scalar_lea.vmem %s424_s28, 128  ;;  %p589_p2 = scmp.lt.s32.totalorder %s424_s28, %s424_s28 }
 0x3b1   :  { %p585_p1 = scmp.ne.s32.totalorder %s424_s28, %s584_s29  ;;  %p590_p3 = scmp.lt.s32.totalorder %s584_s29, %s584_s29 }
 0x3b3   :  { %p591_p4 = por %p590_p3, %p589_p2 }
 0x3b5   :  { %p592_p5 = pnand %p591_p4, %p585_p1 }
 0x46b   :  { %v408_v39 = vpop.f32.mrf.mxu1 }
 0x46c   :  { %v409_v40 = vadd.f32 %v453_v38, %v408_v39 }
 0x46d   :  { %v509_v41 = vpop.f32.mrf.mxu1 }
 0x46e   :  { %v412_v42 = vmul.f32 0.5, %v409_v40 }
 0x470   :  { %522 = vtanh.f32 %v412_v42 }
 0x47d   :  { %v523_v43 = vpop.eup %522 }
 0x47e   :  { %v414_v44 = vadd.f32 1.0, %v523_v43 }
 0x480   :  { %v415_v45 = vmul.f32 0.5, %v414_v44 }
 0x482   :  { %416 = vst.msk [vmem:[#allocation7] sm:$0xff] %vm74_vm1, %v415_v45 }
 0x483   :  { %595 = shalt.err (!%p592_p5)
}
 0x484   :  { %426 = dma.vmem_to_hbm [thread:$0]  %s424_s28, 128, %s764_s9, [#allocation4]  }
 0x485   :  { %608 = dma.done.wait [#allocation4], 128  }
 0x486   :  { %609 = vsyncadd [#allocation4], 4294967168 }
 0x487   :  { %610 = dma.done.wait [#allocation9], 128  }
 0x488   :  { %611 = vsyncadd [#allocation9], 4294967168 }
 0x489   :  { %443 = vsyncpa [#allocation3], 1 }
 0x48a   :  { %444 = vsyncpa [#allocation6], 1 }
 0x48b   :  { %445 = vsyncpa [#allocation4], 1 }
 0x48c   :  { %446 = vsyncpa [#allocation9], 1 }

// kernel: tpu_custom_call.1
= control target key start
LH: loop header
LB: loop body
LE: loop exit
PB: predicated region body
PF: predicated region fallthrough
CT: control target
= control target key end

     0   :  { %16 = vsyncpa [#allocation3], 0  ;;  %s755_s0 = inlined_call_operand.vmem [shape: f32[8,32], index: 0, kind: input, shape index: {}]   ;;  %s756_s1 = inlined_call_operand.vmem [shape: f32[32,32], index: 1, kind: input, shape index: {}]   ;;  %s757_s2 = inlined_call_operand.vmem [shape: f32[1,32], index: 2, kind: input, shape index: {}]   ;;  %s758_s3 = inlined_call_operand.vmem [shape: f32[32,8], index: 3, kind: input, shape index: {}]   ;;  %s759_s4 = inlined_call_operand.hbm [shape: f32[1,8], index: 4, kind: input, shape index: {}]   ;;  %s760_s5 = inlined_call_operand.vmem [shape: f32[8,32], index: 5, kind: input, shape index: {}]   ;;  %s761_s6 = inlined_call_operand.vmem [shape: f32[1,32], index: 6, kind: input, shape index: {}]   ;;  %s762_s7 = inlined_call_operand.hbm [shape: f32[32,32], index: 7, kind: input, shape index: {}]   ;;  %s763_s8 = inlined_call_operand.vmem [shape: f32[1,32], index: 8, kind: input, shape index: {}]   ;;  %s764_s9 = inlined_call_operand.hbm [shape: f32[8,32], index: 9, kind: output, shape index: {0}]   ;;  %s765_s10 = inlined_call_operand.hbm [shape: f32[8,8], index: 10, kind: output, shape index: {1}]  }
   0x1   :  { %17 = vsyncpa [#allocation6], 0 }
   0x2   :  { %18 = vsyncpa [#allocation4], 0 }
   0x3   :  { %19 = vsyncpa [#allocation9], 0  ;;  %s612_s13 = smov [#allocation2]   ;;  %s613_s15 = smov [#allocation5]  }
   0x4   :  { %s34_s14 = sshll.u32 %s612_s13, 4  ;;  %s47_s16 = sshll.u32 %s613_s15, 4  ;;  %s35_s14 = int_to_ptr.vmem [resolvable:$true] %s34_s14  ;;  %s48_s16 = int_to_ptr.vmem [resolvable:$true] %s47_s16 }
   0x5   :  { %s532_s17 = scalar_lea.vmem %s35_s14, 16  ;;  %s536_s18 = scalar_lea.vmem %s35_s14, 32 }
   0x6   :  { %p533_p0 = scmp.ne.s32.totalorder %s35_s14, %s532_s17  ;;  %p537_p1 = scmp.lt.s32.totalorder %s35_s14, %s35_s14 }
   0x7   :  { %p538_p2 = scmp.lt.s32.totalorder %s536_s18, %s532_s17 }
   0x9   :  { %p539_p3 = por %p538_p2, %p537_p1 }
   0xb   :  { %p540_p4 = pnand %p539_p3, %p533_p0 }
   0xd   :  { %543 = shalt.err (!%p540_p4)
}
   0xe   :  { %37 = dma.hbm_to_vmem [thread:$0]  %s759_s4, 16, %s35_s14, [#allocation3]  }
   0xf   :  { %s552_s21 = scalar_lea.vmem %s48_s16, 512  ;;  %p557_p6 = scmp.lt.s32.totalorder %s48_s16, %s48_s16 }
  0x10   :  { %p553_p5 = scmp.ne.s32.totalorder %s48_s16, %s552_s21  ;;  %p558_p7 = scmp.lt.s32.totalorder %s552_s21, %s552_s21 }
  0x12   :  { %p559_p8 = por %p558_p7, %p557_p6 }
  0x14   :  { %p560_p9 = pnand %p559_p8, %p553_p5 }
  0x16   :  { %563 = shalt.err (!%p560_p9)
}
  0x17   :  { %s614_s22 = smov 128   ;;  %s615_s23 = smov 8  }
  0x18   :  { %53 = dma.hbm_to_vmem [thread:$0]  %s762_s7, 512, %s48_s16, [#allocation6], %s614_s22, %s614_s22, %s615_s23  }
  0x19   :  { %604 = dma.done.wait [#allocation3], 16  }
  0x1a   :  { %605 = vsyncadd [#allocation3], 4294967280 }
  0x1b   :  { %606 = dma.done.wait [#allocation6], 512  }
  0x1c   :  { %607 = vsyncadd [#allocation6], 4294966784  ;;  %v616_v0 = vmov 0.0   ;;  %vm617_vm0 = vmmov 0   ;;  %v66_v1 = vld [vmem:[%s756_s1 + $0x18] sm:$0xff]  ;;  %v65_v2 = vld [vmem:[%s756_s1 + $0x10] sm:$0xff] }
  0x1d   :  { %472 = vmatprep.subr.mxu0 %v616_v0  ;;  %480 = vmatprep.mubr.msk.f32.mxu0 %vm617_vm0, %v616_v0  ;;  %v152_v3 = vld [vmem:[%s758_s3 + $0x18] sm:$0xff]  ;;  %v64_v4 = vld [vmem:[%s756_s1 + $0x8] sm:$0xff]  ;;  %v63_v5 = vld [vmem:[%s756_s1] sm:$0xff]  ;;  %vm74_vm1 = vcmask 261120   ;;  %vm233_vm2 = vcmask 64512   ;;  %s618_s23 = smov [#allocation8]  }
  0x1e   :  { %483 = vmatprep.subr.mxu1 %v616_v0  ;;  %491 = vmatprep.mubr.msk.f32.mxu1 %vm617_vm0, %v616_v0  ;;  %v62_v6 = vld [vmem:[%s755_s0] sm:$0xff]  ;;  %v151_v7 = vld [vmem:[%s758_s3 + $0x10] sm:$0xff]  ;;  %v150_v8 = vld [vmem:[%s758_s3 + $0x8] sm:$0xff]  ;;  %s433_s24 = sshll.u32 %s618_s23, 4  ;;  %s434_s24 = int_to_ptr.vmem [resolvable:$true] %s433_s24 }
  0x1f   :  { %473 = vmatpush3.msra.mxu0 %v66_v1  ;;  %484 = vmatpush3.msra.mxu1 %v152_v3  ;;  %v149_v9 = vld [vmem:[%s758_s3] sm:$0xff]  ;;  %v330_v30 = vld [vmem:[#allocation5 + $0x10] sm:$0xff]  ;;  %v329_v31 = vld [vmem:[#allocation5 + $0x8] sm:$0xff]  ;;  %s564_s25 = scalar_lea.vmem %s434_s24, 128  ;;  %p569_p11 = scmp.lt.s32.totalorder %s434_s24, %s434_s24 }
  0x20   :  { %474 = vmatprep.subr.mxu0 %v616_v0  ;;  %485 = vmatprep.subr.mxu1 %v616_v0  ;;  %v447_v10 = vld [vmem:[%s757_s2] ss:$0 sm:$0xff]  ;;  %v328_v32 = vld [vmem:[#allocation5] sm:$0xff]  ;;  %p565_p10 = scmp.ne.s32.totalorder %s434_s24, %s564_s25  ;;  %p570_p12 = scmp.lt.s32.totalorder %s564_s25, %s564_s25 }
  0x21   :  { %475 = vmatpush3.msra.mxu0 %v65_v2  ;;  %486 = vmatpush3.msra.mxu1 %v151_v7  ;;  %v449_v15 = vld [vmem:[#allocation2] ss:$0 sm:$0xff] }
  0x22   :  { %476 = vmatprep.subr.mxu0 %v616_v0  ;;  %487 = vmatprep.subr.mxu1 %v616_v0  ;;  %v246_v25 = vld [vmem:[%s760_s5] sm:$0xff]  ;;  %p571_p13 = por %p570_p12, %p569_p11 }
  0x23   :  { %477 = vmatpush3.msra.mxu0 %v64_v4  ;;  %488 = vmatpush3.msra.mxu1 %v150_v8  ;;  %v331_v26 = vld [vmem:[#allocation5 + $0x18] sm:$0xff] }
  0x24   :  { %478 = vmatprep.subr.mxu0 %v616_v0  ;;  %489 = vmatprep.subr.mxu1 %v616_v0  ;;  %v451_v33 = vld [vmem:[%s761_s6] ss:$0 sm:$0xff]  ;;  %p572_p0 = pnand %p571_p13, %p565_p10 }
  0x25   :  { %479 = vmatpush3.msra.mxu0 %v63_v5  ;;  %490 = vmatpush3.msra.mxu1 %v149_v9 }
  0x26   :  { %481 = vmatmul.mubr.msk.f32.vlgmr.msra.gmra.mxu0 %vm74_vm1, %v62_v6  ;;  %494 = vmatprep.subr.mxu0 %v616_v0 }
  0x27   :  { %496 = vmatprep.mubr.msk.f32.mxu0 %vm617_vm0, %v616_v0  ;;  %499 = vmatprep.subr.mxu1 %v616_v0 }
  0x28   :  { %495 = vmatpush3.msra.mxu0 %v246_v25 }
  0xe6   :  { %v144_v11 = vpop.f32.mrf.mxu0 }
  0xe7   :  { %v145_v12 = vadd.f32 %v447_v10, %v144_v11 }
  0xe8   :  { %v482_v13 = vpop.f32.mrf.mxu0 }
  0xe9   :  { %v148_v14 = vmax.f32 %v145_v12, 0.0 }
  0xeb   :  { %492 = vmatmul.mubr.msk.f32.vlgmr.msra.gmra.mxu1 %vm74_vm1, %v148_v14 }
  0xec   :  { %507 = vmatprep.mubr.msk.f32.mxu1 %vm617_vm0, %v616_v0  ;;  %500 = vmatpush3.msra.mxu1 %v331_v26 }
  0xed   :  { %501 = vmatprep.subr.mxu1 %v616_v0 }
  0xee   :  { %502 = vmatpush3.msra.mxu1 %v330_v30 }
  0xef   :  { %503 = vmatprep.subr.mxu1 %v616_v0 }
  0xf0   :  { %504 = vmatpush3.msra.mxu1 %v329_v31 }
  0xf1   :  { %505 = vmatprep.subr.mxu1 %v616_v0 }
  0xf2   :  { %506 = vmatpush3.msra.mxu1 %v328_v32 }
 0x1ab   :  { %v229_v16 = vpop.f32.mrf.mxu1 }
 0x1ac   :  { %v230_v17 = vadd.f32 %v449_v15, %v229_v16 }
 0x1ad   :  { %v493_v18 = vpop.f32.mrf.mxu1 }
 0x1ae   :  { %v235_v19 = vsel %vm233_vm2, %v230_v17, -inf  ;;  %234 = vst.msk [vmem:[#allocation8] sm:$0xff] %vm233_vm2, %v230_v17 }
 0x1af   :  { %236 = vmax.xlane.f32.xlu0 %v235_v19 }
 0x238   :  { %v237_v20 = vpop.xlane.xlu0 %236 }
 0x239   :  { %v238_v21 = vsub.f32 %v230_v17, %v237_v20 }
 0x23b   :  { %v239_v22 = vmul.f32 1.442695, %v238_v21 }
 0x23d   :  { %518 = vpow2.f32 %v239_v22 }
 0x24a   :  { %v519_v23 = vpop.eup %518 }
 0x24b   :  { %v241_v24 = vsel %vm233_vm2, %v519_v23, 0.0 }
 0x24c   :  { %242 = vadd.xlane.f32.xlu0 %v241_v24 }
 0x2d5   :  { %v243_v27 = vpop.xlane.xlu0 %242 }
 0x2d6   :  { %520 = vrcp.f32 %v243_v27 }
 0x2e3   :  { %v521_v28 = vpop.eup %520 }
 0x2e4   :  { %v245_v29 = vmul.f32 %v521_v28, %v519_v23 }
 0x2e6   :  { %497 = vmatmul.mubr.msk.f32.vlgmr.msra.gmra.mxu0 %vm233_vm2, %v245_v29 }
 0x3a6   :  { %v323_v34 = vpop.f32.mrf.mxu0 }
 0x3a7   :  { %v324_v35 = vadd.f32 %v451_v33, %v323_v34 }
 0x3a8   :  { %v498_v36 = vpop.f32.mrf.mxu0 }
 0x3a9   :  { %v327_v37 = vmax.f32 %v324_v35, 0.0 }
 0x3ab   :  { %508 = vmatmul.mubr.msk.f32.vlgmr.msra.gmra.mxu1 %vm74_vm1, %v327_v37 }
 0x3ac   :  { %575 = shalt.err (!%p572_p0)
}
 0x3ad   :  { %436 = dma.vmem_to_hbm [thread:$0]  %s434_s24, 128, %s765_s10, [#allocation9]   ;;  %v453_v38 = vld [vmem:[%s763_s8] ss:$0 sm:$0xff] }
 0x3ae   :  { %s619_s27 = smov [#allocation7]  }
 0x3af   :  { %s423_s28 = sshll.u32 %s619_s27, 4  ;;  %s424_s28 = int_to_ptr.vmem [resolvable:$true] %s423_s28 }
 0x3b0   :  { %s584_s29 = scalar_lea.vmem %s424_s28, 128  ;;  %p589_p2 = scmp.lt.s32.totalorder %s424_s28, %s424_s28 }
 0x3b1   :  { %p585_p1 = scmp.ne.s32.totalorder %s424_s28, %s584_s29  ;;  %p590_p3 = scmp.lt.s32.totalorder %s584_s29, %s584_s29 }
 0x3b3   :  { %p591_p4 = por %p590_p3, %p589_p2 }
 0x3b5   :  { %p592_p5 = pnand %p591_p4, %p585_p1 }
 0x46b   :  { %v408_v39 = vpop.f32.mrf.mxu1 }
 0x46c   :  { %v409_v40 = vadd.f32 %v453_v38, %v408_v39 }
 0x46d   :  { %v509_v41 = vpop.f32.mrf.mxu1 }
 0x46e   :  { %v412_v42 = vmul.f32 0.5, %v409_v40 }
 0x470   :  { %522 = vtanh.f32 %v412_v42 }
 0x47d   :  { %v523_v43 = vpop.eup %522 }
 0x47e   :  { %v414_v44 = vadd.f32 1.0, %v523_v43 }
 0x480   :  { %v415_v45 = vmul.f32 0.5, %v414_v44 }
 0x482   :  { %416 = vst.msk [vmem:[#allocation7] sm:$0xff] %vm74_vm1, %v415_v45 }
 0x483   :  { %595 = shalt.err (!%p592_p5)
}
 0x484   :  { %426 = dma.vmem_to_hbm [thread:$0]  %s424_s28, 128, %s764_s9, [#allocation4]  }
 0x485   :  { %608 = dma.done.wait [#allocation4], 128  }
 0x486   :  { %609 = vsyncadd [#allocation4], 4294967168 }
 0x487   :  { %610 = dma.done.wait [#allocation9], 128  }
 0x488   :  { %611 = vsyncadd [#allocation9], 4294967168 }
 0x489   :  { %443 = vsyncpa [#allocation3], 1 }
 0x48a   :  { %444 = vsyncpa [#allocation6], 1 }
 0x48b   :  { %445 = vsyncpa [#allocation4], 1 }
 0x48c   :  { %446 = vsyncpa [#allocation9], 1 }

</bundles_post_ra>
